<compile_context>
chip_gen: v7x
topology: tpu7x:2x2x1
jax: 0.10.0
libtpu: 0.0.40
codegen_flags: <defaults>
</compile_context>

<pallas_src>
import functools

import jax
import jax.numpy as jnp
from jax.experimental import pallas as pl
from jax.experimental.pallas import tpu as pltpu


_LANE = 128     # vreg lane width (last dim)
_SUBLANE = 8    # vreg sublane width (second-to-last dim, f32)


def _round_up(x, m):
    return ((x + m - 1) // m) * m


def _mlp_classifier_kernel(z_ref, w_ref, b_ref, o_ref):
    # ReLU on the VPU, matmul on the MXU with explicit f32 accumulation,
    # bias add fused into the single lane-dense output store.
    z = jnp.maximum(z_ref[...], 0.0)                       # (tb, K_pad)
    acc = jnp.dot(z, w_ref[...],                           # (tb, K_pad) @ (K_pad, C_pad)
                  preferred_element_type=jnp.float32)
    o_ref[...] = (acc + b_ref[...]).astype(o_ref.dtype)    # (tb, C_pad), unmasked store


@functools.partial(jax.jit, static_argnames=("tile_b",))
def mlp_classifier_forward(z, w, b, *, tile_b=256):
    """logits = relu(z) @ w.T + b.

    z: (B, K) f32, w: (C, K) f32 (PyTorch nn.Linear layout), b: (C,) f32.
    Returns (B, C) f32.
    """
    B, K = z.shape
    C, Kw = w.shape
    assert K == Kw and b.shape == (C,)

    # ---- Layout glue (outside the kernel) --------------------------------
    # Pad C to a full 128-lane tile (lane-dense output), K to a sublane
    # multiple, and pad the batch so it tiles evenly over the grid.
    C_pad = _round_up(C, _LANE)
    K_pad = _round_up(K, _SUBLANE)
    tb = _round_up(min(tile_b, _round_up(B, _SUBLANE)), _SUBLANE)
    B_pad = _round_up(B, tb)

    z_p = jnp.pad(z.astype(jnp.float32), ((0, B_pad - B), (0, K_pad - K)))
    w_t = jnp.pad(jnp.transpose(w).astype(jnp.float32),
                  ((0, K_pad - K), (0, C_pad - C)))            # (K_pad, C_pad)
    b_p = jnp.pad(b.astype(jnp.float32), (0, C_pad - C)).reshape(1, C_pad)

    grid_b = B_pad // tb

    cost = pl.CostEstimate(
        flops=2 * B_pad * K_pad * C_pad,
        transcendentals=0,
        bytes_accessed=4 * (B_pad * K_pad + K_pad * C_pad + C_pad + B_pad * C_pad),
    )

    out = pl.pallas_call(
        _mlp_classifier_kernel,
        out_shape=jax.ShapeDtypeStruct((B_pad, C_pad), jnp.float32),
        grid_spec=pltpu.PrefetchScalarGridSpec(
            num_scalar_prefetch=0,
            grid=(grid_b,),
            in_specs=[
                pl.BlockSpec((tb, K_pad), lambda i: (i, 0)),      # z: tiled over batch
                pl.BlockSpec((K_pad, C_pad), lambda i: (0, 0)),   # W^T: resident
                pl.BlockSpec((1, C_pad), lambda i: (0, 0)),       # bias: resident
            ],
            out_specs=pl.BlockSpec((tb, C_pad), lambda i: (i, 0)),
        ),
        compiler_params=pltpu.CompilerParams(
            dimension_semantics=("parallel",)),   # shard batch tiles across cores
        cost_estimate=cost,
    )(z_p, w_t, b_p)

    # Slice away batch/class padding.
    return out[:B, :C]


if __name__ == "__main__":
    num_classes = 10
    bottleneck = 16
    batch = 8

    key = jax.random.PRNGKey(0)
    kz, kw, kb = jax.random.split(key, 3)

    # Deterministic parameter init (matches nn.Linear fan-in uniform bound).
    bound = 1.0 / (bottleneck ** 0.5)
    w = jax.random.uniform(kw, (num_classes, bottleneck), jnp.float32, -bound, bound)
    b = jax.random.uniform(kb, (num_classes,), jnp.float32, -bound, bound)

    # Example latent input z.
    z = jax.random.normal(kz, (batch, bottleneck), jnp.float32)

    logits = mlp_classifier_forward(z, w, b)
    logits = jax.block_until_ready(logits)

    # Pure-JAX reference check.
    ref = jnp.maximum(z, 0.0) @ w.T + b
    assert logits.shape == (batch, num_classes)
    assert jnp.allclose(logits, ref, atol=1e-5, rtol=1e-5)

    print("KERNEL_OK")
</pallas_src>

<mosaic_0001>
module attributes {stable_mosaic.version = 11 : i64} {
  func.func @_mlp_classifier_kernel(%arg0: i32, %arg1: memref<8x16xf32, #tpu.memory_space<vmem>>, %arg2: memref<16x128xf32, #tpu.memory_space<vmem>>, %arg3: memref<1x128xf32, #tpu.memory_space<vmem>>, %arg4: memref<8x128xf32, #tpu.memory_space<vmem>>) attributes {dimension_semantics = [#tpu.dimension_semantics<parallel>], iteration_bounds = array<i64: 1>, scalar_prefetch = 0 : i64, scratch_operands = 0 : i64, tpu.core_type = #tpu.core_type<tc>, window_params = [{transform_indices = @transform_0, window_bounds = array<i64: 8, 16>}, {pipeline_mode = #tpu.pipeline_mode<synchronous>, transform_indices = @transform_1, window_bounds = array<i64: 16, 128>}, {pipeline_mode = #tpu.pipeline_mode<synchronous>, transform_indices = @transform_2, window_bounds = array<i64: 1, 128>}, {transform_indices = @transform_3, window_bounds = array<i64: 8, 128>}]} {
    %c0 = arith.constant 0 : index
    %c0_0 = arith.constant 0 : index
    %0 = vector.load %arg1[%c0, %c0_0] : memref<8x16xf32, #tpu.memory_space<vmem>>, vector<8x16xf32>
    %cst = arith.constant 0.000000e+00 : f32
    %1 = vector.broadcast %cst : f32 to vector<8x16xf32>
    %2 = arith.maximumf %0, %1 : vector<8x16xf32>
    %c0_1 = arith.constant 0 : index
    %c0_2 = arith.constant 0 : index
    %3 = vector.load %arg2[%c0_1, %c0_2] : memref<16x128xf32, #tpu.memory_space<vmem>>, vector<16x128xf32>
    %cst_3 = arith.constant dense<0.000000e+00> : vector<8x128xf32>
    %4 = tpu.matmul %2, %3, %cst_3 {dimension_numbers = #tpu.dot_dimension_numbers<[1], [0], [0], [1], [0, 0, 1, 1], [], []>} : vector<8x16xf32>, vector<16x128xf32>, vector<8x128xf32> -> vector<8x128xf32>
    %c0_4 = arith.constant 0 : index
    %c0_5 = arith.constant 0 : index
    %5 = vector.load %arg3[%c0_4, %c0_5] : memref<1x128xf32, #tpu.memory_space<vmem>>, vector<1x128xf32>
    %6 = vector.broadcast %5 : vector<1x128xf32> to vector<8x128xf32>
    %7 = arith.addf %4, %6 : vector<8x128xf32>
    %c0_6 = arith.constant 0 : index
    %c0_7 = arith.constant 0 : index
    %8 = vector.load %arg4[%c0_6, %c0_7] : memref<8x128xf32, #tpu.memory_space<vmem>>, vector<8x128xf32>
    tpu.vector_store %arg4[%c0_6, %c0_7], %7 {strides = array<i32>} : memref<8x128xf32, #tpu.memory_space<vmem>>, vector<8x128xf32>,
    return
  }
  func.func @transform_0(%arg0: i32) -> (i32, i32) {
    %c0_i32 = arith.constant 0 : i32
    %c0_i32_0 = arith.constant 0 : i32
    return %arg0, %c0_i32 : i32, i32
  }
  func.func @transform_1(%arg0: i32) -> (i32, i32) {
    %c0_i32 = arith.constant 0 : i32
    %c0_i32_0 = arith.constant 0 : i32
    %c0_i32_1 = arith.constant 0 : i32
    return %c0_i32, %c0_i32_0 : i32, i32
  }
  func.func @transform_2(%arg0: i32) -> (i32, i32) {
    %c0_i32 = arith.constant 0 : i32
    %c0_i32_0 = arith.constant 0 : i32
    %c0_i32_1 = arith.constant 0 : i32
    return %c0_i32, %c0_i32_0 : i32, i32
  }
  func.func @transform_3(%arg0: i32) -> (i32, i32) {
    %c0_i32 = arith.constant 0 : i32
    %c0_i32_0 = arith.constant 0 : i32
    return %arg0, %c0_i32 : i32, i32
  }
}

</mosaic_0001>

<bundles_post_ra>
// kernel: mlp_classifier_forward.1
= control target key start
LH: loop header
LB: loop body
LE: loop exit
PB: predicated region body
PF: predicated region fallthrough
CT: control target
= control target key end

     0   :  { %v158_v3 = vmov 0.0|0.0   ;;  %vm159_vm0 = vmmov 0   ;;  %v160_v5 = vmov 0.0   ;;  %s206_s0 = inlined_call_operand.vmem [shape: f32[8,16], index: 0, kind: input, shape index: {}]   ;;  %s207_s1 = inlined_call_operand.vmem [shape: f32[16,128], index: 1, kind: input, shape index: {}]   ;;  %s208_s2 = inlined_call_operand.vmem [shape: f32[1,128], index: 2, kind: input, shape index: {}]   ;;  %s209_s3 = inlined_call_operand.hbm [shape: f32[8,128], index: 3, kind: output, shape index: {}]  }
   0x1   :  { %v17_v0 = vld [vmem:[%s207_s1] sm:$0xff]  ;;  %v18_v1 = vld [vmem:[%s207_s1 + $0x8] sm:$0xff]  ;;  %127 = vmatprep.subr.bf16.mxu0 %v158_v3  ;;  %124 = vmatprep.mubr.msk.f32.mxu0 %vm159_vm0, %v160_v5 }
   0x2   :  { %v15_v2 = vld [vmem:[%s206_s0] sm:$0xff]  ;;  %v128_v4 = vpack.c.bf16 %v18_v1, %v17_v0 }
   0x3   :  { %8 = vsyncpa [#allocation3], 0  ;;  %v16_v6 = vmax.f32 %v15_v2, 0.0  ;;  %vm26_vm1 = vcmask 130048   ;;  %v115_v7 = vld [vmem:[%s208_s2] ss:$0 sm:$0xff] }
   0x4   :  { %129 = vmatpush3.bf16.msra.mxu0 %v128_v4  ;;  %s161_s1 = smov [#allocation2]  }
   0x5   :  { %s107_s20 = sshll.u32 %s161_s1, 4  ;;  %s108_s20 = int_to_ptr.vmem [resolvable:$true] %s107_s20 }
   0x6   :  { %s134_s0 = scalar_lea.vmem %s108_s20, 128  ;;  %p139_p1 = scmp.lt.s32.totalorder %s108_s20, %s108_s20 }
   0x7   :  { %125 = vmatmul.mubr.msk.f32.vlgmr.msra.gmra.mrb[0].mxu0 %vm26_vm1, %v16_v6  ;;  %p135_p0 = scmp.ne.s32.totalorder %s108_s20, %s134_s0  ;;  %p140_p2 = scmp.lt.s32.totalorder %s134_s0, %s134_s0 }
   0x9   :  { %p141_p3 = por %p140_p2, %p139_p1 }
   0xb   :  { %p142_p4 = pnand %p141_p3, %p135_p0 }
  0xda   :  { %v96_v8 = vpop.f32.mrb[0].mxu0 }
  0xdb   :  { %v97_v9 = vadd.f32 %v115_v7, %v96_v8  ;;  %v126_v10 = vpop.f32.mrb[1].mxu0 }
  0xdd   :  { %100 = vst [vmem:[#allocation2] sm:$0xff] %v97_v9 }
  0xde   :  { %145 = shalt.err (!%p142_p4)
}
  0xdf   :  { %s146_s23 = scalar_lea.hbm %s209_s3, 128 }
  0xe0   :  { %p147_p5 = scmp.ne.s32.totalorder %s209_s3, %s146_s23  ;;  %p150_p6 = scmp.lt.u32.totalorder %s146_s23, %s209_s3 }
  0xe2   :  { %p152_p7 = pnand %p150_p6, %p147_p5 }
  0xe4   :  { %155 = shalt.err (!%p152_p7)
}
  0xe5   :  { %110 = dma.vmem_to_hbm [thread:$0]  %s108_s20, 128, %s209_s3, [#allocation3]  }
  0xe6   :  { %156 = dma.done.wait [#allocation3], 128  }
  0xe7   :  { %157 = vsyncadd [#allocation3], 4294967168 }
  0xe8   :  { %114 = vsyncpa [#allocation3], 1 }

</bundles_post_ra>
